<compile_context>
chip_gen: v5e
topology: v5e:2x2
jax: 0.10.0
libtpu: 0.0.40
codegen_flags: <defaults>
</compile_context>

<pallas_src>
import functools

import jax
import jax.numpy as jnp
from jax.experimental import pallas as pl
from jax.experimental.pallas import tpu as pltpu


def _concat_pool_decoder_kernel(out_ref, h_ref,
                                w1h_ref, w1a_ref, w1m_ref, b1_ref,
                                w2_ref, b2_ref,
                                o_ref,
                                sum_acc, max_acc,
                                *, seq_len, tile_s):
    s = pl.program_id(0)

    @pl.when(s == 0)
    def _init():
        sum_acc[...] = jnp.zeros_like(sum_acc)
        max_acc[...] = jnp.full_like(max_acc, -jnp.inf)

    x = out_ref[...].astype(jnp.float32)                      # (tile_s, B, H)

    if seq_len % tile_s != 0:                                 # static: ragged tail
        row = jax.lax.broadcasted_iota(jnp.int32, x.shape, 0) + s * tile_s
        valid = row < seq_len
        x_sum = jnp.where(valid, x, 0.0)
        x_max = jnp.where(valid, x, -jnp.inf)
    else:
        x_sum = x
        x_max = x

    # Pooling reduction over the streamed sequence tiles (f32 accumulators).
    sum_acc[...] += jnp.sum(x_sum, axis=0)                    # (B, H)
    max_acc[...] = jnp.maximum(max_acc[...], jnp.max(x_max, axis=0))

    @pl.when(s == pl.num_programs(0) - 1)
    def _epilogue():
        h = h_ref[...].astype(jnp.float32)                    # (B, H) == hidden[-1]
        # Concat-free first projection (BN1 and 1/S already folded into weights).
        z = (jnp.dot(h, w1h_ref[...], preferred_element_type=jnp.float32)
             + jnp.dot(sum_acc[...], w1a_ref[...], preferred_element_type=jnp.float32)
             + jnp.dot(max_acc[...], w1m_ref[...], preferred_element_type=jnp.float32)
             + b1_ref[...])
        z = jnp.maximum(z, 0.0)                               # ReLU
        # Second projection (BN2 folded into w2/b2).
        o_ref[...] = (jnp.dot(z, w2_ref[...], preferred_element_type=jnp.float32)
                      + b2_ref[...]).astype(o_ref.dtype)


def concat_pooling_decoder(out, hidden_last,
                           w1h, w1a, w1m, b1, w2, b2,
                           *, tile_s=None):
    """out: (S, B, H) seq-major LSTM outputs (f32 or bf16); hidden_last: (B, H)."""
    S, B, H = out.shape
    bneck = w1h.shape[1]
    out_dim = w2.shape[1]
    assert hidden_last.shape == (B, H)
    assert w1h.shape == (H, bneck) and w1a.shape == (H, bneck) and w1m.shape == (H, bneck)

    itemsize = out.dtype.itemsize
    if tile_s is None:
        # Keep the double-buffered streamed tile around ~4 MiB so it fits every
        # generation's scoped-VMEM default with room to spare.
        budget = 4 * 1024 * 1024
        tile_s = max(8, budget // max(1, B * H * itemsize))
    tile_s = int(min(int(tile_s), S))
    n_tiles = pl.cdiv(S, tile_s)

    # Advisory cost hint: this kernel is HBM-read bound on `out`.
    param_bytes = sum(int(a.size) * a.dtype.itemsize
                      for a in (hidden_last, w1h, w1a, w1m, b1, w2, b2))
    bytes_accessed = int(out.size) * itemsize + param_bytes + B * out_dim * 4
    flops = int(2 * S * B * H                      # sum + max pooling
                + 2 * B * (3 * H) * bneck          # first projection (3 dots)
                + 2 * B * bneck * out_dim)         # second projection
    cost = pl.CostEstimate(flops=flops, transcendentals=0,
                           bytes_accessed=bytes_accessed)

    # Explicit VMEM budget: double-buffered input tiles + resident params,
    # accumulators and output block, plus slack.  Clamped to stay safe on v5e
    # (16 MiB scoped default) and v7x (64 MiB physical).
    vmem_limit = (2 * tile_s * B * H * itemsize
                  + 2 * param_bytes
                  + 2 * B * H * 4
                  + 2 * B * out_dim * 4
                  + (1 << 20))
    vmem_limit = int(min(max(vmem_limit, 2 << 20), 32 << 20))

    kernel = functools.partial(_concat_pool_decoder_kernel,
                               seq_len=S, tile_s=tile_s)

    grid_spec = pltpu.PrefetchScalarGridSpec(
        num_scalar_prefetch=0,
        grid=(n_tiles,),
        in_specs=[
            pl.BlockSpec((tile_s, B, H), lambda s: (s, 0, 0)),   # streamed seq tiles
            pl.BlockSpec((B, H), lambda s: (0, 0)),              # hidden[-1]
            pl.BlockSpec((H, bneck), lambda s: (0, 0)),          # W1_h   (BN1 folded)
            pl.BlockSpec((H, bneck), lambda s: (0, 0)),          # W1_avg (BN1 + 1/S folded)
            pl.BlockSpec((H, bneck), lambda s: (0, 0)),          # W1_max (BN1 folded)
            pl.BlockSpec((1, bneck), lambda s: (0, 0)),          # b1'
            pl.BlockSpec((bneck, out_dim), lambda s: (0, 0)),    # W2'    (BN2 folded)
            pl.BlockSpec((1, out_dim), lambda s: (0, 0)),        # b2'
        ],
        out_specs=pl.BlockSpec((B, out_dim), lambda s: (0, 0)),
        scratch_shapes=[pltpu.VMEM((B, H), jnp.float32),         # running sum
                        pltpu.VMEM((B, H), jnp.float32)],        # running max
    )

    return pl.pallas_call(
        kernel,
        out_shape=jax.ShapeDtypeStruct((B, out_dim), jnp.float32),
        grid_spec=grid_spec,
        compiler_params=pltpu.CompilerParams(
            dimension_semantics=("arbitrary",),   # sequence axis is a reduction
            vmem_limit_bytes=vmem_limit),
        cost_estimate=cost,
    )(out, hidden_last, w1h, w1a, w1m, b1, w2, b2)


def prepare_decoder_params(w1, b1, w2, b2,
                           bn1_gamma, bn1_beta, bn1_mean, bn1_var,
                           bn2_gamma, bn2_beta, bn2_mean, bn2_var,
                           seq_len, eps=1e-5):
    """Fold eval-mode BatchNorms into the linears and split W1 for the kernel.

    PyTorch conventions: w1 (bneck, 3H), b1 (bneck,), w2 (out_dim, bneck), b2 (out_dim,).
    Returns (w1_h, w1_avg, w1_max, b1', w2', b2'); 1/seq_len is folded into
    w1_avg so the kernel's sum-pool equals the module's mean-pool.
    """
    s1 = bn1_gamma / jnp.sqrt(bn1_var + eps)
    t1 = bn1_beta - bn1_mean * s1
    s2 = bn2_gamma / jnp.sqrt(bn2_var + eps)
    t2 = bn2_beta - bn2_mean * s2

    w1_f = w1.T * s1[:, None]            # (3H, bneck), BN1 folded in
    b1_f = t1 @ w1.T + b1                # (bneck,)
    w2_f = w2.T * s2[:, None]            # (bneck, out_dim), BN2 folded in
    b2_f = t2 @ w2.T + b2                # (out_dim,)

    hidden_dim = w1_f.shape[0] // 3
    w1_h = w1_f[:hidden_dim]
    w1_avg = w1_f[hidden_dim:2 * hidden_dim] / float(seq_len)
    w1_max = w1_f[2 * hidden_dim:]
    return w1_h, w1_avg, w1_max, b1_f[None, :], w2_f, b2_f[None, :]


if __name__ == "__main__":
    # Small shapes implied by the forward pass; S chosen non-divisible by the
    # sequence tile so the masked-tail path is exercised.
    S, B, H = 12, 8, 32            # seq_len, batch, hidden_dim
    L = 2                          # num rnn layers (hidden: (L, B, H))
    BNECK, OUT = 16, 8             # bneck_dim, out_dim
    EPS = 1e-5

    key = jax.random.PRNGKey(0)
    ks = jax.random.split(key, 14)

    out = jax.random.normal(ks[0], (S, B, H), jnp.float32)
    hidden = jax.random.normal(ks[1], (L, B, H), jnp.float32)

    # BatchNorm1d(3H) params (eval / running stats)
    bn1_gamma = 1.0 + 0.1 * jax.random.normal(ks[2], (3 * H,), jnp.float32)
    bn1_beta = 0.1 * jax.random.normal(ks[3], (3 * H,), jnp.float32)
    bn1_mean = 0.05 * jax.random.normal(ks[4], (3 * H,), jnp.float32)
    bn1_var = jnp.abs(1.0 + 0.1 * jax.random.normal(ks[5], (3 * H,), jnp.float32))

    # Linear(3H -> BNECK), PyTorch layout (out_features, in_features)
    w1 = jax.random.normal(ks[6], (BNECK, 3 * H), jnp.float32) / jnp.sqrt(3.0 * H)
    b1 = 0.01 * jax.random.normal(ks[7], (BNECK,), jnp.float32)

    # BatchNorm1d(BNECK) params
    bn2_gamma = 1.0 + 0.1 * jax.random.normal(ks[8], (BNECK,), jnp.float32)
    bn2_beta = 0.1 * jax.random.normal(ks[9], (BNECK,), jnp.float32)
    bn2_mean = 0.05 * jax.random.normal(ks[10], (BNECK,), jnp.float32)
    bn2_var = jnp.abs(1.0 + 0.1 * jax.random.normal(ks[11], (BNECK,), jnp.float32))

    # Linear(BNECK -> OUT), PyTorch layout
    w2 = jax.random.normal(ks[12], (OUT, BNECK), jnp.float32) / jnp.sqrt(1.0 * BNECK)
    b2 = 0.01 * jax.random.normal(ks[13], (OUT,), jnp.float32)

    w1h, w1a, w1m, b1f, w2f, b2f = prepare_decoder_params(
        w1, b1, w2, b2,
        bn1_gamma, bn1_beta, bn1_mean, bn1_var,
        bn2_gamma, bn2_beta, bn2_mean, bn2_var,
        seq_len=S, eps=EPS)

    hidden_last = hidden[-1]       # glue: hidden[-1] slice done outside the kernel

    result = concat_pooling_decoder(out, hidden_last,
                                    w1h, w1a, w1m, b1f, w2f, b2f,
                                    tile_s=8)   # 2 grid steps + masked tail
    result = jax.block_until_ready(result)

    # Pure-JAX reference replicating the PyTorch module exactly (eval mode).
    avg_ref = jnp.mean(out, axis=0)
    max_ref = jnp.max(out, axis=0)
    pooled_ref = jnp.concatenate([hidden_last, avg_ref, max_ref], axis=1)
    y_ref = (pooled_ref - bn1_mean) / jnp.sqrt(bn1_var + EPS) * bn1_gamma + bn1_beta
    y_ref = jnp.maximum(y_ref @ w1.T + b1, 0.0)
    y_ref = (y_ref - bn2_mean) / jnp.sqrt(bn2_var + EPS) * bn2_gamma + bn2_beta
    y_ref = y_ref @ w2.T + b2

    assert result.shape == (B, OUT)
    assert jnp.allclose(result, y_ref, atol=1e-4, rtol=1e-4)
    print("KERNEL_OK")
</pallas_src>

<mosaic_0001>
module attributes {stable_mosaic.version = 11 : i64} {
  func.func @_concat_pool_decoder_kernel(%arg0: i32, %arg1: memref<8x8x32xf32, #tpu.memory_space<vmem>>, %arg2: memref<8x32xf32, #tpu.memory_space<vmem>>, %arg3: memref<32x16xf32, #tpu.memory_space<vmem>>, %arg4: memref<32x16xf32, #tpu.memory_space<vmem>>, %arg5: memref<32x16xf32, #tpu.memory_space<vmem>>, %arg6: memref<1x16xf32, #tpu.memory_space<vmem>>, %arg7: memref<16x8xf32, #tpu.memory_space<vmem>>, %arg8: memref<1x8xf32, #tpu.memory_space<vmem>>, %arg9: memref<8x8xf32, #tpu.memory_space<vmem>>, %arg10: memref<8x32xf32, #tpu.memory_space<vmem>>, %arg11: memref<8x32xf32, #tpu.memory_space<vmem>>) attributes {dimension_semantics = [#tpu.dimension_semantics<arbitrary>], iteration_bounds = array<i64: 2>, scalar_prefetch = 0 : i64, scratch_operands = 2 : i64, tpu.core_type = #tpu.core_type<tc>, window_params = [{transform_indices = @transform_0, window_bounds = array<i64: 8, 8, 32>}, {pipeline_mode = #tpu.pipeline_mode<synchronous>, transform_indices = @transform_1, window_bounds = array<i64: 8, 32>}, {pipeline_mode = #tpu.pipeline_mode<synchronous>, transform_indices = @transform_2, window_bounds = array<i64: 32, 16>}, {pipeline_mode = #tpu.pipeline_mode<synchronous>, transform_indices = @transform_3, window_bounds = array<i64: 32, 16>}, {pipeline_mode = #tpu.pipeline_mode<synchronous>, transform_indices = @transform_4, window_bounds = array<i64: 32, 16>}, {pipeline_mode = #tpu.pipeline_mode<synchronous>, transform_indices = @transform_5, window_bounds = array<i64: 1, 16>}, {pipeline_mode = #tpu.pipeline_mode<synchronous>, transform_indices = @transform_6, window_bounds = array<i64: 16, 8>}, {pipeline_mode = #tpu.pipeline_mode<synchronous>, transform_indices = @transform_7, window_bounds = array<i64: 1, 8>}, {pipeline_mode = #tpu.pipeline_mode<synchronous>, transform_indices = @transform_8, window_bounds = array<i64: 8, 8>}]} {
    %c0_i32 = arith.constant 0 : i32
    %0 = arith.cmpi eq, %arg0, %c0_i32 : i32
    %1 = arith.extui %0 : i1 to i32
    %c0_i32_0 = arith.constant 0 : i32
    %2 = arith.cmpi ne, %1, %c0_i32_0 : i32
    scf.if %2 {
      %cst_15 = arith.constant 0.000000e+00 : f32
      %25 = vector.broadcast %cst_15 : f32 to vector<8x32xf32>
      %c0_16 = arith.constant 0 : index
      %c0_17 = arith.constant 0 : index
      %26 = vector.load %arg10[%c0_16, %c0_17] : memref<8x32xf32, #tpu.memory_space<vmem>>, vector<8x32xf32>
      tpu.vector_store %arg10[%c0_16, %c0_17], %25 {strides = array<i32>} : memref<8x32xf32, #tpu.memory_space<vmem>>, vector<8x32xf32>,
      %cst_18 = arith.constant 0xFF800000 : f32
      %27 = vector.broadcast %cst_18 : f32 to vector<8x32xf32>
      %c0_19 = arith.constant 0 : index
      %c0_20 = arith.constant 0 : index
      %28 = vector.load %arg11[%c0_19, %c0_20] : memref<8x32xf32, #tpu.memory_space<vmem>>, vector<8x32xf32>
      tpu.vector_store %arg11[%c0_19, %c0_20], %27 {strides = array<i32>} : memref<8x32xf32, #tpu.memory_space<vmem>>, vector<8x32xf32>,
    } else {
    }
    %c0 = arith.constant 0 : index
    %c0_1 = arith.constant 0 : index
    %c0_2 = arith.constant 0 : index
    %3 = vector.load %arg1[%c0, %c0_1, %c0_2] : memref<8x8x32xf32, #tpu.memory_space<vmem>>, vector<8x8x32xf32>
    %4 = tpu.iota {dimensions = array<i32: 0>} : vector<8x8x32xi32>
    %c8_i32 = arith.constant 8 : i32
    %5 = arith.muli %arg0, %c8_i32 : i32
    %6 = vector.broadcast %5 : i32 to vector<8x8x32xi32>
    %7 = arith.addi %4, %6 : vector<8x8x32xi32>
    %c12_i32 = arith.constant 12 : i32
    %8 = vector.broadcast %c12_i32 : i32 to vector<8x8x32xi32>
    %9 = arith.cmpi slt, %7, %8 : vector<8x8x32xi32>
    %cst = arith.constant 0.000000e+00 : f32
    %10 = vector.broadcast %cst : f32 to vector<8x8x32xf32>
    %11 = arith.select %9, %3, %10 : vector<8x8x32xi1>, vector<8x8x32xf32>
    %cst_3 = arith.constant 0xFF800000 : f32
    %12 = vector.broadcast %cst_3 : f32 to vector<8x8x32xf32>
    %13 = arith.select %9, %3, %12 : vector<8x8x32xi1>, vector<8x8x32xf32>
    %c0_4 = arith.constant 0 : index
    %c0_5 = arith.constant 0 : index
    %14 = vector.load %arg10[%c0_4, %c0_5] : memref<8x32xf32, #tpu.memory_space<vmem>>, vector<8x32xf32>
    %cst_6 = arith.constant dense<0.000000e+00> : vector<8x32xf32>
    %15 = vector.multi_reduction <add>, %11, %cst_6 [0] : vector<8x8x32xf32> to vector<8x32xf32>
    %16 = arith.addf %14, %15 : vector<8x32xf32>
    %c0_7 = arith.constant 0 : index
    %c0_8 = arith.constant 0 : index
    %17 = vector.load %arg10[%c0_7, %c0_8] : memref<8x32xf32, #tpu.memory_space<vmem>>, vector<8x32xf32>
    tpu.vector_store %arg10[%c0_7, %c0_8], %16 {strides = array<i32>} : memref<8x32xf32, #tpu.memory_space<vmem>>, vector<8x32xf32>,
    %c0_9 = arith.constant 0 : index
    %c0_10 = arith.constant 0 : index
    %18 = vector.load %arg11[%c0_9, %c0_10] : memref<8x32xf32, #tpu.memory_space<vmem>>, vector<8x32xf32>
    %cst_11 = arith.constant dense<0xFF800000> : vector<8x32xf32>
    %19 = vector.multi_reduction <maximumf>, %13, %cst_11 [0] : vector<8x8x32xf32> to vector<8x32xf32>
    %20 = arith.maximumf %18, %19 : vector<8x32xf32>
    %c0_12 = arith.constant 0 : index
    %c0_13 = arith.constant 0 : index
    %21 = vector.load %arg11[%c0_12, %c0_13] : memref<8x32xf32, #tpu.memory_space<vmem>>, vector<8x32xf32>
    tpu.vector_store %arg11[%c0_12, %c0_13], %20 {strides = array<i32>} : memref<8x32xf32, #tpu.memory_space<vmem>>, vector<8x32xf32>,
    %c1_i32 = arith.constant 1 : i32
    %22 = arith.cmpi eq, %arg0, %c1_i32 : i32
    %23 = arith.extui %22 : i1 to i32
    %c0_i32_14 = arith.constant 0 : i32
    %24 = arith.cmpi ne, %23, %c0_i32_14 : i32
    scf.if %24 {
      %c0_15 = arith.constant 0 : index
      %c0_16 = arith.constant 0 : index
      %25 = vector.load %arg2[%c0_15, %c0_16] : memref<8x32xf32, #tpu.memory_space<vmem>>, vector<8x32xf32>
      %c0_17 = arith.constant 0 : index
      %c0_18 = arith.constant 0 : index
      %26 = vector.load %arg3[%c0_17, %c0_18] : memref<32x16xf32, #tpu.memory_space<vmem>>, vector<32x16xf32>
      %cst_19 = arith.constant dense<0.000000e+00> : vector<8x16xf32>
      %27 = tpu.matmul %25, %26, %cst_19 {dimension_numbers = #tpu.dot_dimension_numbers<[1], [0], [0], [1], [0, 0, 1, 1], [], []>} : vector<8x32xf32>, vector<32x16xf32>, vector<8x16xf32> -> vector<8x16xf32>
      %c0_20 = arith.constant 0 : index
      %c0_21 = arith.constant 0 : index
      %28 = vector.load %arg10[%c0_20, %c0_21] : memref<8x32xf32, #tpu.memory_space<vmem>>, vector<8x32xf32>
      %c0_22 = arith.constant 0 : index
      %c0_23 = arith.constant 0 : index
      %29 = vector.load %arg4[%c0_22, %c0_23] : memref<32x16xf32, #tpu.memory_space<vmem>>, vector<32x16xf32>
      %cst_24 = arith.constant dense<0.000000e+00> : vector<8x16xf32>
      %30 = tpu.matmul %28, %29, %cst_24 {dimension_numbers = #tpu.dot_dimension_numbers<[1], [0], [0], [1], [0, 0, 1, 1], [], []>} : vector<8x32xf32>, vector<32x16xf32>, vector<8x16xf32> -> vector<8x16xf32>
      %31 = arith.addf %27, %30 : vector<8x16xf32>
      %c0_25 = arith.constant 0 : index
      %c0_26 = arith.constant 0 : index
      %32 = vector.load %arg11[%c0_25, %c0_26] : memref<8x32xf32, #tpu.memory_space<vmem>>, vector<8x32xf32>
      %c0_27 = arith.constant 0 : index
      %c0_28 = arith.constant 0 : index
      %33 = vector.load %arg5[%c0_27, %c0_28] : memref<32x16xf32, #tpu.memory_space<vmem>>, vector<32x16xf32>
      %cst_29 = arith.constant dense<0.000000e+00> : vector<8x16xf32>
      %34 = tpu.matmul %32, %33, %cst_29 {dimension_numbers = #tpu.dot_dimension_numbers<[1], [0], [0], [1], [0, 0, 1, 1], [], []>} : vector<8x32xf32>, vector<32x16xf32>, vector<8x16xf32> -> vector<8x16xf32>
      %35 = arith.addf %31, %34 : vector<8x16xf32>
      %c0_30 = arith.constant 0 : index
      %c0_31 = arith.constant 0 : index
      %36 = vector.load %arg6[%c0_30, %c0_31] : memref<1x16xf32, #tpu.memory_space<vmem>>, vector<1x16xf32>
      %37 = vector.broadcast %36 : vector<1x16xf32> to vector<8x16xf32>
      %38 = arith.addf %35, %37 : vector<8x16xf32>
      %cst_32 = arith.constant 0.000000e+00 : f32
      %39 = vector.broadcast %cst_32 : f32 to vector<8x16xf32>
      %40 = arith.maximumf %38, %39 : vector<8x16xf32>
      %c0_33 = arith.constant 0 : index
      %c0_34 = arith.constant 0 : index
      %41 = vector.load %arg7[%c0_33, %c0_34] : memref<16x8xf32, #tpu.memory_space<vmem>>, vector<16x8xf32>
      %cst_35 = arith.constant dense<0.000000e+00> : vector<8x8xf32>
      %42 = tpu.matmul %40, %41, %cst_35 {dimension_numbers = #tpu.dot_dimension_numbers<[1], [0], [0], [1], [0, 0, 1, 1], [], []>} : vector<8x16xf32>, vector<16x8xf32>, vector<8x8xf32> -> vector<8x8xf32>
      %c0_36 = arith.constant 0 : index
      %c0_37 = arith.constant 0 : index
      %43 = vector.load %arg8[%c0_36, %c0_37] : memref<1x8xf32, #tpu.memory_space<vmem>>, vector<1x8xf32>
      %44 = vector.broadcast %43 : vector<1x8xf32> to vector<8x8xf32>
      %45 = arith.addf %42, %44 : vector<8x8xf32>
      %c0_38 = arith.constant 0 : index
      %c0_39 = arith.constant 0 : index
      %46 = vector.load %arg9[%c0_38, %c0_39] : memref<8x8xf32, #tpu.memory_space<vmem>>, vector<8x8xf32>
      tpu.vector_store %arg9[%c0_38, %c0_39], %45 {strides = array<i32>} : memref<8x8xf32, #tpu.memory_space<vmem>>, vector<8x8xf32>,
    } else {
    }
    return
  }
  func.func @transform_0(%arg0: i32) -> (i32, i32, i32) {
    %c0_i32 = arith.constant 0 : i32
    %c0_i32_0 = arith.constant 0 : i32
    %c0_i32_1 = arith.constant 0 : i32
    return %arg0, %c0_i32, %c0_i32_0 : i32, i32, i32
  }
  func.func @transform_1(%arg0: i32) -> (i32, i32) {
    %c0_i32 = arith.constant 0 : i32
    %c0_i32_0 = arith.constant 0 : i32
    %c0_i32_1 = arith.constant 0 : i32
    return %c0_i32, %c0_i32_0 : i32, i32
  }
  func.func @transform_2(%arg0: i32) -> (i32, i32) {
    %c0_i32 = arith.constant 0 : i32
    %c0_i32_0 = arith.constant 0 : i32
    %c0_i32_1 = arith.constant 0 : i32
    return %c0_i32, %c0_i32_0 : i32, i32
  }
  func.func @transform_3(%arg0: i32) -> (i32, i32) {
    %c0_i32 = arith.constant 0 : i32
    %c0_i32_0 = arith.constant 0 : i32
    %c0_i32_1 = arith.constant 0 : i32
    return %c0_i32, %c0_i32_0 : i32, i32
  }
  func.func @transform_4(%arg0: i32) -> (i32, i32) {
    %c0_i32 = arith.constant 0 : i32
    %c0_i32_0 = arith.constant 0 : i32
    %c0_i32_1 = arith.constant 0 : i32
    return %c0_i32, %c0_i32_0 : i32, i32
  }
  func.func @transform_5(%arg0: i32) -> (i32, i32) {
    %c0_i32 = arith.constant 0 : i32
    %c0_i32_0 = arith.constant 0 : i32
    %c0_i32_1 = arith.constant 0 : i32
    return %c0_i32, %c0_i32_0 : i32, i32
  }
  func.func @transform_6(%arg0: i32) -> (i32, i32) {
    %c0_i32 = arith.constant 0 : i32
    %c0_i32_0 = arith.constant 0 : i32
    %c0_i32_1 = arith.constant 0 : i32
    return %c0_i32, %c0_i32_0 : i32, i32
  }
  func.func @transform_7(%arg0: i32) -> (i32, i32) {
    %c0_i32 = arith.constant 0 : i32
    %c0_i32_0 = arith.constant 0 : i32
    %c0_i32_1 = arith.constant 0 : i32
    return %c0_i32, %c0_i32_0 : i32, i32
  }
  func.func @transform_8(%arg0: i32) -> (i32, i32) {
    %c0_i32 = arith.constant 0 : i32
    %c0_i32_0 = arith.constant 0 : i32
    %c0_i32_1 = arith.constant 0 : i32
    return %c0_i32, %c0_i32_0 : i32, i32
  }
}

</mosaic_0001>

<bundles_post_ra>
// kernel: tpu_custom_call.1
= control target key start
LH: loop header
LB: loop body
LE: loop exit
PB: predicated region body
PF: predicated region fallthrough
CT: control target
= control target key end

     0   :  { %13 = vsyncpa [#allocation5], 0  ;;  %s698_s27 = smov 0   ;;  %s819_s0 = inlined_call_operand.vmem [shape: f32[12,8,32], index: 0, kind: input, shape index: {}]   ;;  %s820_s1 = inlined_call_operand.vmem [shape: f32[8,32], index: 1, kind: input, shape index: {}]   ;;  %s821_s2 = inlined_call_operand.vmem [shape: f32[32,16], index: 2, kind: input, shape index: {}]   ;;  %s822_s3 = inlined_call_operand.vmem [shape: f32[32,16], index: 3, kind: input, shape index: {}]   ;;  %s823_s4 = inlined_call_operand.vmem [shape: f32[32,16], index: 4, kind: input, shape index: {}]   ;;  %s824_s5 = inlined_call_operand.vmem [shape: f32[1,16], index: 5, kind: input, shape index: {}]   ;;  %s825_s6 = inlined_call_operand.vmem [shape: f32[16,8], index: 6, kind: input, shape index: {}]   ;;  %s826_s7 = inlined_call_operand.vmem [shape: f32[1,8], index: 7, kind: input, shape index: {}]   ;;  %s827_s8 = inlined_call_operand.hbm [shape: f32[8,8], index: 8, kind: output, shape index: {}]  }
   0x1 LB: > { %s704_s28 = sadd.s32 4294967295, %s648_s27   ;;  %p577_p0 = scmp.ge.s32.totalorder %s648_s27, 1  ;;  %s648_s27 = sphi %s698_s27, %s19_s27  }
   0x2   : > { %p267_p1 = scmp.lt.s32.totalorder %s648_s27, 3 }
   0x4   : > { %p268_p2 = pnand %p577_p0, %p267_p1 }
   0x5   : > { %s578_s29 = sshll.u32 (!%p268_p2), %s704_s28, 3  ;;  %p580_p4 = scmp.ne.s32.totalorder (!%p268_p2), %s704_s28, 0 }
   0x6   : > { %271 = sbr.rel (%p268_p2) target bundleno = 330 (0x14a), region = 52  ;;  %p305_p3 = scmp.lt.s32.totalorder (!%p268_p2), %s578_s29, 11 }
   0xb   : > { %s306_s30 = scalar_select %p305_p3, %s578_s29, 11 }
   0xc   : > { %317 = sbr.rel (%p580_p4) target bundleno = 20 (0x14), region = 56 }
   0xd   : > { %s579_s9 = sshll.u32 %s306_s30, 3 }
   0xe   : > { %s712_s12 = scalar_lea.vmem %s819_s0, %s579_s9 }
  0x11   : > { %vm318_vm0 = vcmask 261120   ;;  %v650_v0 = vmov 0.0   ;;  %v651_v1 = vmov -inf  }
  0x12   : > { %319 = vst.msk [vmem:[#allocation2] sm:$0xff] %vm318_vm0, %v650_v0 }
  0x13   : > { %320 = vst.msk [vmem:[#allocation3] sm:$0xff] %vm318_vm0, %v651_v1 }
  0x14 PF: > { %v330_v2 = vstv %s578_s29  ;;  %v321_v3 = vld [vmem:[%s712_s12] sm:$0xff]  ;;  %v322_v4 = vld [vmem:[%s712_s12 + $0x8] sm:$0xff]  ;;  %v323_v8 = vld [vmem:[%s712_s12 + $0x10] sm:$0xff]  ;;  %vm363_vm8 = vcmask 261120   ;;  %p582_p5 = scmp.ne.s32.totalorder %s704_s28, 1 }
  0x15   : > { %v331_v5 = vadd.s32 1, %v330_v2  ;;  %v332_v6 = vadd.s32 2, %v330_v2  ;;  %v333_v7 = vadd.s32 3, %v330_v2  ;;  %v324_v9 = vld [vmem:[%s712_s12 + $0x18] sm:$0xff]  ;;  %v334_v10 = vadd.s32 4, %v330_v2  ;;  %v325_v14 = vld [vmem:[%s712_s12 + $0x20] sm:$0xff] }
  0x16   : > { %v335_v11 = vadd.s32 5, %v330_v2  ;;  %v336_v12 = vadd.s32 6, %v330_v2  ;;  %v337_v13 = vadd.s32 7, %v330_v2  ;;  %v326_v15 = vld [vmem:[%s712_s12 + $0x28] sm:$0xff]  ;;  %vm338_vm1 = vcmp.lt.s32.totalorder %v330_v2, 12  ;;  %v328_v16 = vld [vmem:[%s712_s12 + $0x38] sm:$0xff] }
  0x17   : > { %vm339_vm2 = vcmp.lt.s32.totalorder %v331_v5, 12  ;;  %vm340_vm3 = vcmp.lt.s32.totalorder %v332_v6, 12  ;;  %vm341_vm4 = vcmp.lt.s32.totalorder %v333_v7, 12  ;;  %vm342_vm5 = vcmp.lt.s32.totalorder %v334_v10, 12  ;;  %v327_v21 = vld [vmem:[%s712_s12 + $0x30] sm:$0xff] }
  0x18   : > { %vm343_vm6 = vcmp.lt.s32.totalorder %v335_v11, 12  ;;  %vm345_vm7 = vcmp.lt.s32.totalorder %v337_v13, 12  ;;  %v346_v17 = vsel %vm338_vm1, %v321_v3, 0.0  ;;  %v347_v18 = vsel %vm339_vm2, %v322_v4, 0.0 }
  0x19   : > { %v348_v19 = vsel %vm340_vm3, %v323_v8, 0.0  ;;  %v349_v20 = vsel %vm341_vm4, %v324_v9, 0.0  ;;  %vm344_vm9 = vcmp.lt.s32.totalorder %v336_v12, 12  ;;  %v350_v22 = vsel %vm342_vm5, %v325_v14, 0.0  ;;  %v362_v0 = vld [vmem:[#allocation2] sm:$0xff] }
  0x1a   : > { %v351_v23 = vsel %vm343_vm6, %v326_v15, 0.0  ;;  %v352_v24 = vsel %vm344_vm9, %v327_v21, 0.0  ;;  %v364_v25 = vsel %vm363_vm8, %v346_v17, 0.0  ;;  %v365_v26 = vsel %vm363_vm8, %v347_v18, 0.0  ;;  %v381_v61 = vld [vmem:[#allocation3] sm:$0xff] }
  0x1b   : > { %v367_v27 = vsel %vm363_vm8, %v348_v19, 0.0  ;;  %v353_v28 = vsel %vm345_vm7, %v328_v16, 0.0  ;;  %v361_v29 = vsel %vm345_vm7, %v328_v16, -inf  ;;  %v366_v30 = vadd.f32 %v365_v26, %v364_v25 }
  0x1c   : > { %v369_v31 = vsel %vm363_vm8, %v349_v20, 0.0  ;;  %v371_v32 = vsel %vm363_vm8, %v350_v22, 0.0  ;;  %v373_v33 = vsel %vm363_vm8, %v351_v23, 0.0  ;;  %v354_v34 = vsel %vm338_vm1, %v321_v3, -inf }
  0x1d   : > { %v355_v35 = vsel %vm339_vm2, %v322_v4, -inf  ;;  %v368_v36 = vadd.f32 %v367_v27, %v366_v30  ;;  %v356_v37 = vsel %vm340_vm3, %v323_v8, -inf  ;;  %v357_v38 = vsel %vm341_vm4, %v324_v9, -inf }
  0x1e   : > { %v358_v39 = vsel %vm342_vm5, %v325_v14, -inf  ;;  %v359_v40 = vsel %vm343_vm6, %v326_v15, -inf  ;;  %v360_v41 = vsel %vm344_vm9, %v327_v21, -inf  ;;  %v382_v42 = vsel %vm363_vm8, %v354_v34, -inf }
  0x1f   : > { %v383_v43 = vsel %vm363_vm8, %v355_v35, -inf  ;;  %v370_v44 = vadd.f32 %v369_v31, %v368_v36  ;;  %v384_v45 = vsel %vm363_vm8, %v356_v37, -inf  ;;  %v385_v46 = vsel %vm363_vm8, %v357_v38, -inf }
  0x20   : > { %v386_v47 = vsel %vm363_vm8, %v358_v39, -inf  ;;  %v388_v49 = vsel %vm363_vm8, %v359_v40, -inf  ;;  %v390_v50 = vsel %vm363_vm8, %v360_v41, -inf  ;;  %v392_v51 = vsel %vm363_vm8, %v361_v29, -inf }
  0x21   : > { %v387_v48 = vmax.f32 %v382_v42, %v386_v47  ;;  %v372_v52 = vadd.f32 %v371_v32, %v370_v44  ;;  %v389_v53 = vmax.f32 %v383_v43, %v388_v49  ;;  %v391_v54 = vmax.f32 %v384_v45, %v390_v50 }
  0x22   : > { %v393_v55 = vmax.f32 %v385_v46, %v392_v51  ;;  %v375_v56 = vsel %vm363_vm8, %v352_v24, 0.0  ;;  %v377_v60 = vsel %vm363_vm8, %v353_v28, 0.0 }
  0x23   : > { %v374_v57 = vadd.f32 %v373_v33, %v372_v52  ;;  %v394_v58 = vmax.f32 %v387_v48, %v389_v53 }
  0x24   : > { %v395_v59 = vmax.f32 %v391_v54, %v393_v55 }
  0x25   : > { %v376_v62 = vadd.f32 %v375_v56, %v374_v57 }
  0x26   : > { %v396_v63 = vmax.f32 %v394_v58, %v395_v59 }
  0x27   : > { %v378_v1 = vadd.f32 %v377_v60, %v376_v62  ;;  %402 = sbr.rel (%p582_p5) target bundleno = 325 (0x145), region = 60 }
  0x28   : > { %v397_v2 = vmax.f32 %v381_v61, %v396_v63 }
  0x29   : > { %v379_v3 = vadd.f32 %v378_v1, %v362_v0 }
  0x2a   : > { %398 = vst.msk [vmem:[#allocation3] sm:$0xff] %vm363_vm8, %v397_v2 }
  0x2b   : > { %380 = vst.msk [vmem:[#allocation2] sm:$0xff] %vm363_vm8, %v379_v3 }
  0x2c   : > { %v463_v4 = vld [vmem:[%s823_s4 + $0x18] sm:$0xff]  ;;  %v462_v5 = vld [vmem:[%s823_s4 + $0x10] sm:$0xff]  ;;  %v461_v9 = vld [vmem:[%s823_s4 + $0x8] sm:$0xff]  ;;  %vm500_vm10 = vcmask 130048   ;;  %vm524_vm11 = vcmask 64512  }
  0x2d   : > { %v412_v6 = vld [vmem:[%s822_s3 + $0x18] sm:$0xff]  ;;  %479 = vmatpush.msra.mxu2 %v463_v4  ;;  %v411_v8 = vld [vmem:[%s822_s3 + $0x10] sm:$0xff]  ;;  %v410_v11 = vld [vmem:[%s822_s3 + $0x8] sm:$0xff] }
  0x2e   : > { %428 = vmatpush.msra.mxu0 %v412_v6  ;;  %v407_v7 = vld [vmem:[%s821_s2 + $0x18] sm:$0xff]  ;;  %v406_v10 = vld [vmem:[%s821_s2 + $0x10] sm:$0xff]  ;;  %v405_v12 = vld [vmem:[%s821_s2 + $0x8] sm:$0xff] }
  0x2f   : > { %451 = vmatpush.msra.mxu1 %v407_v7  ;;  %480 = vmatpush.msra.mxu2 %v462_v5  ;;  %v460_v13 = vld [vmem:[%s823_s4] sm:$0xff]  ;;  %v495_v19 = vld [vmem:[%s825_s6 + $0x8] sm:$0xff] }
  0x30   : > { %429 = vmatpush.msra.mxu0 %v411_v8  ;;  %v409_v15 = vld [vmem:[%s822_s3] sm:$0xff]  ;;  %518 = vmatpush.msra.mxu3 %v495_v19 }
  0x31   : > { %452 = vmatpush.msra.mxu1 %v406_v10  ;;  %v459_v14 = vld [vmem:[#allocation3] sm:$0xff]  ;;  %481 = vmatpush.msra.mxu2 %v461_v9  ;;  %v404_v16 = vld [vmem:[%s821_s2] sm:$0xff] }
  0x32   : > { %430 = vmatpush.msra.mxu0 %v410_v11  ;;  %v408_v17 = vld [vmem:[#allocation2] sm:$0xff] }
  0x33   : > { %453 = vmatpush.msra.mxu1 %v405_v12  ;;  %v403_v18 = vld [vmem:[%s820_s1] sm:$0xff]  ;;  %482 = vmatpush.msra.mxu2 %v460_v13 }
  0x34   : > { %431 = vmatpush.msra.mxu0 %v409_v15  ;;  %585 = vmatmul.msk.f32.vlgmr.msra.gmra.mxu2 %vm363_vm8, %v459_v14  ;;  %v494_v20 = vld [vmem:[%s825_s6] sm:$0xff] }
  0x35   : > { %454 = vmatpush.msra.mxu1 %v404_v16  ;;  %583 = vmatmul.msk.f32.vlgmr.msra.gmra.mxu0 %vm363_vm8, %v408_v17  ;;  %v608_v24 = vld [vmem:[%s824_s5] ss:$0 sm:$0xff] }
  0x36   : > { %584 = vmatmul.msk.f32.vlgmr.msra.gmra.mxu1 %vm363_vm8, %v403_v18  ;;  %519 = vmatpush.msra.mxu3 %v494_v20  ;;  %v609_v29 = vld [vmem:[%s826_s7] ss:$0 sm:$0xff] }
  0xb2   : > { %v433_v21 = vpop.f32.mrf.mxu0 }
  0xb3   : > { %v456_v22 = vpop.f32.mrf.mxu1 }
  0xb4   : > { %v457_v23 = vadd.f32 %v456_v22, %v433_v21 }
  0xb7   : > { %v484_v25 = vpop.f32.mrf.mxu2 }
  0xb8   : > { %v487_v26 = vadd.f32 %v484_v25, %v457_v23 }
  0xba   : > { %v492_v27 = vadd.f32 %v608_v24, %v487_v26 }
  0xbc   : > { %v493_v28 = vmax.f32 %v492_v27, 0.0 }
  0xbe   : > { %586 = vmatmul.msk.f32.vlgmr.msra.gmra.mxu3 %vm500_vm10, %v493_v28 }
 0x141   : > { %v521_v30 = vpop.f32.mrf.mxu3 }
 0x142   : > { %v522_v31 = vadd.f32 %v609_v29, %v521_v30 }
 0x144   : > { %525 = vst.msk [vmem:[#allocation4] sm:$0xff] %vm524_vm11, %v522_v31 }
 0x145 PF: > { %p595_p6 = scmp.eq.s32.totalorder %s704_s28, 1  ;;  %s652_s29 = smov [#allocation4]  }
 0x146   : > { %s532_s30 = sshll.u32 %s652_s29, 4  ;;  %s534_s11 = sshll.u32 %s827_s8, 4  ;;  %s533_s30 = int_to_ptr.vmem [resolvable:$true] %s532_s30  ;;  %s535_s11 = int_to_ptr.hbm [resolvable:$true] %s534_s11 }
 0x147   : > { %592 = dma.vmem_to_hbm [thread:$0]  (%p595_p6), %s533_s30, 128, %s535_s11, [#allocation5]  }
 0x148   : > { %643 = dma.done.wait (%p595_p6), [#allocation5], 128  }
 0x149   : > { %645 = vsyncadd (%p595_p6), [#allocation5], 4294967168 }
 0x14a PF: > { %s19_s27 = sadd.s32 1, %s648_s27  }
 0x14b   : > { %p16_p7 = scmp.ge.s32.totalorder %s19_s27, 4  }
 0x14d   :  { %18 = sbr.rel (!%p16_p7) target bundleno = 1 (0x1), region = 87 }
 0x152   :  { %548 = vsyncpa [#allocation5], 1 }
 0x153   :  { %550 = vsyncpa [#allocation5 + $0x1], 1 }

</bundles_post_ra>
